<compile_context>
chip_gen: v7x
topology: tpu7x:2x2x1
jax: 0.10.0
libtpu: 0.0.40
codegen_flags: <defaults>
</compile_context>

<pallas_src>
import functools

import jax
import jax.numpy as jnp
from jax.experimental import pallas as pl
from jax.experimental.pallas import tpu as pltpu


# ----------------------------------------------------------------------------
# Generation-aware VMEM budget + tiling helpers
# ----------------------------------------------------------------------------
_VMEM_LIMIT_CACHE = None


def _vmem_limit():
    """Scoped-VMEM budget: ~96 MB on v5e/v6e (128 MiB phys), ~48 MB on v7x."""
    global _VMEM_LIMIT_CACHE
    if _VMEM_LIMIT_CACHE is None:
        limit = 48 * 1024 * 1024  # safe everywhere (v7x has 64 MiB physical)
        try:
            cap = int(pltpu.get_tpu_info().vmem_capacity_bytes)
            limit = max(limit, min((cap * 3) // 4, 96 * 1024 * 1024))
        except Exception:
            pass
        _VMEM_LIMIT_CACHE = limit
    return _VMEM_LIMIT_CACHE


def _sublane_multiple(dtype):
    # 8 for f32, 16 for bf16, 32 for int8/fp8 (packed sublanes).
    return max(8, 32 // jnp.dtype(dtype).itemsize)


def _pick_tile(dim, target, multiple=8):
    """Largest tile <= target that divides `dim` and is a multiple of `multiple`
    (or the full dim, which is always a legal block)."""
    if dim <= target:
        return dim
    start = target - (target % multiple)
    for t in range(start, multiple - 1, -multiple):
        if dim % t == 0:
            return t
    return dim  # fallback: single full block


# ----------------------------------------------------------------------------
# Kernel 1: head-major projection  y[n,h,:,:] = x[n] @ W[h] + b[h]
# ----------------------------------------------------------------------------
def _proj_heads_kernel(x_ref, w_ref, b_ref, o_ref):
    acc = jnp.dot(x_ref[0], w_ref[0], preferred_element_type=jnp.float32)
    o_ref[0, 0] = (acc + b_ref[0].astype(jnp.float32)).astype(o_ref.dtype)


def project_heads(x, w_heads, b_heads, *, tm=256):
    """x: (N,L,Din); w_heads: (H,Din,dh); b_heads: (H,1,dh) -> (N,H,L,dh)."""
    N, L, Din = x.shape
    H, _, dh = w_heads.shape
    tm = _pick_tile(L, tm, _sublane_multiple(x.dtype))
    return pl.pallas_call(
        _proj_heads_kernel,
        out_shape=jax.ShapeDtypeStruct((N, H, L, dh), x.dtype),
        grid_spec=pl.GridSpec(
            # h innermost: the x block index is unchanged across h, so x is
            # DMA'd once per (n, i) tile and reused for every head.
            grid=(N, L // tm, H),
            in_specs=[
                pl.BlockSpec((1, tm, Din), lambda n, i, h: (n, i, 0)),
                pl.BlockSpec((1, Din, dh), lambda n, i, h: (h, 0, 0)),
                pl.BlockSpec((1, 1, dh), lambda n, i, h: (h, 0, 0)),
            ],
            out_specs=pl.BlockSpec((1, 1, tm, dh), lambda n, i, h: (n, h, i, 0)),
        ),
        compiler_params=pltpu.CompilerParams(
            dimension_semantics=("parallel", "parallel", "parallel"),
            vmem_limit_bytes=_vmem_limit()),
    )(x, w_heads, b_heads)


# ----------------------------------------------------------------------------
# Kernel 2: fused head-major QKV projection (self-attention fast path)
# ----------------------------------------------------------------------------
def _proj_qkv_kernel(x_ref, wq_ref, wk_ref, wv_ref, bq_ref, bk_ref, bv_ref,
                     q_ref, k_ref, v_ref):
    x = x_ref[0]

    def proj(w_ref, b_ref, o_ref):
        acc = jnp.dot(x, w_ref[0], preferred_element_type=jnp.float32)
        o_ref[0, 0] = (acc + b_ref[0].astype(jnp.float32)).astype(o_ref.dtype)

    proj(wq_ref, bq_ref, q_ref)
    proj(wk_ref, bk_ref, k_ref)
    proj(wv_ref, bv_ref, v_ref)


def project_qkv_heads(x, wq, wk, wv, bq, bk, bv, *, tm=256):
    """x: (N,L,Din) -> q,k: (N,H,L,dk), v: (N,H,L,dv); x read from HBM once."""
    N, L, Din = x.shape
    H, _, dk = wq.shape
    dv = wv.shape[2]
    tm = _pick_tile(L, tm, _sublane_multiple(x.dtype))

    def wspec(dh):
        return pl.BlockSpec((1, Din, dh), lambda n, i, h: (h, 0, 0))

    def bspec(dh):
        return pl.BlockSpec((1, 1, dh), lambda n, i, h: (h, 0, 0))

    def ospec(dh):
        return pl.BlockSpec((1, 1, tm, dh), lambda n, i, h: (n, h, i, 0))

    return pl.pallas_call(
        _proj_qkv_kernel,
        out_shape=(
            jax.ShapeDtypeStruct((N, H, L, dk), x.dtype),
            jax.ShapeDtypeStruct((N, H, L, dk), x.dtype),
            jax.ShapeDtypeStruct((N, H, L, dv), x.dtype),
        ),
        grid_spec=pl.GridSpec(
            grid=(N, L // tm, H),
            in_specs=[
                pl.BlockSpec((1, tm, Din), lambda n, i, h: (n, i, 0)),
                wspec(dk), wspec(dk), wspec(dv),
                bspec(dk), bspec(dk), bspec(dv),
            ],
            out_specs=[ospec(dk), ospec(dk), ospec(dv)],
        ),
        compiler_params=pltpu.CompilerParams(
            dimension_semantics=("parallel", "parallel", "parallel"),
            vmem_limit_bytes=_vmem_limit()),
    )(x, wq, wk, wv, bq, bk, bv)


# ----------------------------------------------------------------------------
# Kernel 3: flash-style multi-head attention with fused output projection.
#   grid = (N, L/tq, H, S/tk); H and S are reduction ("arbitrary") axes.
#   Per-head online softmax (m, l, acc) + cross-head out-projection accumulator.
#   Wo is fully resident in VMEM (constant-index block), indexed per head.
# ----------------------------------------------------------------------------
def _flash_attn_kernel(q_ref, k_ref, v_ref, wo_ref, bo_ref, o_ref,
                       m_sc, l_sc, acc_sc, out_sc, *, scale):
    h = pl.program_id(2)
    si = pl.program_id(3)
    nh = pl.num_programs(2)
    ns = pl.num_programs(3)

    @pl.when((h == 0) & (si == 0))
    def _():
        out_sc[...] = jnp.zeros_like(out_sc)

    @pl.when(si == 0)
    def _():
        m_sc[...] = jnp.full_like(m_sc, -jnp.inf)
        l_sc[...] = jnp.zeros_like(l_sc)
        acc_sc[...] = jnp.zeros_like(acc_sc)

    # scale hoisted onto the (tq, E) q block instead of the (tq, tk) scores.
    q = q_ref[0, 0] * scale   # (tq, E), compute dtype (bf16 -> full MXU rate)
    k = k_ref[0, 0]           # (tk, E)
    v = v_ref[0, 0]           # (tk, Dv)

    # scores (tq, tk), f32 accumulation; contraction on E, no explicit .T
    s = jax.lax.dot_general(q, k, (((1,), (1,)), ((), ())),
                            preferred_element_type=jnp.float32)
    m_new = jnp.maximum(m_sc[...], s.max(axis=-1, keepdims=True))
    alpha = jnp.exp(m_sc[...] - m_new)
    p = jnp.exp(s - m_new)
    # TODO(synk): on v6e/v7x compute p/alpha in bf16 if the EUP slot saturates.
    l_sc[...] = alpha * l_sc[...] + p.sum(axis=-1, keepdims=True)
    acc_sc[...] = alpha * acc_sc[...] + jnp.dot(
        p.astype(v.dtype), v, preferred_element_type=jnp.float32)
    m_sc[...] = m_new

    # per-head epilogue: deferred normalization + fused out-projection slice
    @pl.when(si == ns - 1)
    def _():
        attn = acc_sc[...] * pl.reciprocal(l_sc[...], approx=True)   # (tq, Dv)
        out_sc[...] += jnp.dot(attn.astype(wo_ref.dtype), wo_ref[h],
                               preferred_element_type=jnp.float32)

    # final epilogue: add bias, write lane-dense (tq, d_model) output slab
    @pl.when((h == nh - 1) & (si == ns - 1))
    def _():
        o_ref[0] = (out_sc[...] + bo_ref[...].astype(jnp.float32)).astype(o_ref.dtype)


def flash_attention_with_outproj(q, k, v, wo_heads, bo, *, out_dtype=None,
                                 tq=256, tk=256):
    """q: (N,H,L,E)  k: (N,H,S,E)  v: (N,H,S,Dv)  wo_heads: (H,Dv,D)  bo: (1,D)
    -> (N, L, D)  (attention output already passed through the out projection)"""
    N, H, L, E = q.shape
    S = k.shape[2]
    Dv = v.shape[3]
    D = wo_heads.shape[2]
    out_dtype = out_dtype or q.dtype
    mult = _sublane_multiple(q.dtype)
    tq = _pick_tile(L, tq, mult)
    tk = _pick_tile(S, tk, mult)
    scale = 1.0 / (E ** 0.5)
    kernel = functools.partial(_flash_attn_kernel, scale=scale)
    # TODO(synk): block >=2 heads per grid step to better fill the 256-wide MXU
    # on v6e/v7x when E/Dv == 64, and pl.Buffered(3) on k/v for v5e HBM.
    return pl.pallas_call(
        kernel,
        out_shape=jax.ShapeDtypeStruct((N, L, D), out_dtype),
        grid_spec=pltpu.PrefetchScalarGridSpec(
            num_scalar_prefetch=0,
            grid=(N, L // tq, H, S // tk),
            in_specs=[
                pl.BlockSpec((1, 1, tq, E), lambda n, qi, h, si: (n, h, qi, 0)),
                pl.BlockSpec((1, 1, tk, E), lambda n, qi, h, si: (n, h, si, 0)),
                pl.BlockSpec((1, 1, tk, Dv), lambda n, qi, h, si: (n, h, si, 0)),
                # full Wo resident in VMEM (constant block index -> one DMA)
                pl.BlockSpec((H, Dv, D), lambda n, qi, h, si: (0, 0, 0)),
                pl.BlockSpec((1, D), lambda n, qi, h, si: (0, 0)),
            ],
            out_specs=pl.BlockSpec((1, tq, D), lambda n, qi, h, si: (n, qi, 0)),
            scratch_shapes=[
                pltpu.VMEM((tq, 1), jnp.float32),    # m: running max
                pltpu.VMEM((tq, 1), jnp.float32),    # l: running denom
                pltpu.VMEM((tq, Dv), jnp.float32),   # per-head PV accumulator
                pltpu.VMEM((tq, D), jnp.float32),    # out-projection accumulator
            ]),
        compiler_params=pltpu.CompilerParams(
            dimension_semantics=("parallel", "parallel", "arbitrary", "arbitrary"),
            vmem_limit_bytes=_vmem_limit()),
    )(q, k, v, wo_heads, bo)


# ----------------------------------------------------------------------------
# AttentionLayer forward
# ----------------------------------------------------------------------------
def attention_layer_forward(params, queries, keys, values, n_heads,
                            compute_dtype=jnp.bfloat16, tq=256, tk=256):
    """Forward pass of AttentionLayer (full attention; masks not supported yet).

    compute_dtype: dtype used for the MXU matmul operands (weights + q/k/v).
    Accumulation is always f32 and the returned array has queries.dtype.
    Pass compute_dtype=None (or the input dtype) for exact-precision parity.
    """
    del tq  # (tiling chosen inside the attention wrapper defaults)
    del tk
    out_dtype = queries.dtype
    cd = compute_dtype or queries.dtype

    # Matmul operands in the compute dtype; biases stay in their stored dtype
    # (they are added to the f32 accumulators, so no precision is lost).
    wq = params['wq'].astype(cd)
    wk = params['wk'].astype(cd)
    wv = params['wv'].astype(cd)
    wo = params['wo'].astype(cd)
    bq, bk, bv, bo = params['bq'], params['bk'], params['bv'], params['bo']

    qx = queries.astype(cd)
    if (queries is keys) and (keys is values):
        # Self-attention fast path: fused QKV projection, x read from HBM once.
        # (Identity check: only triggers when the same array object is passed.)
        q, k, v = project_qkv_heads(qx, wq, wk, wv, bq, bk, bv)
    else:
        kx = keys.astype(cd)
        vx = values.astype(cd)
        q = project_heads(qx, wq, bq)   # (N, H, L, dk) head-major, no transpose
        k = project_heads(kx, wk, bk)   # (N, H, S, dk)
        v = project_heads(vx, wv, bv)   # (N, H, S, dv)

    return flash_attention_with_outproj(q, k, v, wo, bo, out_dtype=out_dtype)


def init_params(key, d_model, n_heads, d_keys=None, d_values=None,
                dtype=jnp.float32):
    """Weights stored head-major and kernel-ready (no per-call reshapes):
       wq/wk: (H, d_model, d_keys), wv: (H, d_model, d_values),
       bq/bk/bv: (H, 1, dh), wo: (H, d_values, d_model), bo: (1, d_model).
       For production use dtype=jnp.bfloat16 so no per-call casts are needed."""
    d_keys = d_keys or d_model // n_heads
    d_values = d_values or d_model // n_heads
    ks = jax.random.split(key, 8)

    def lin_heads(kw, kb, in_f, dh):
        bound = 1.0 / (in_f ** 0.5)  # PyTorch nn.Linear default init range
        w = jax.random.uniform(kw, (n_heads, in_f, dh), dtype, -bound, bound)
        b = jax.random.uniform(kb, (n_heads, 1, dh), dtype, -bound, bound)
        return w, b

    wq, bq = lin_heads(ks[0], ks[1], d_model, d_keys)
    wk, bk = lin_heads(ks[2], ks[3], d_model, d_keys)
    wv, bv = lin_heads(ks[4], ks[5], d_model, d_values)
    bound_o = 1.0 / ((d_values * n_heads) ** 0.5)
    wo = jax.random.uniform(ks[6], (n_heads, d_values, d_model), dtype,
                            -bound_o, bound_o)
    bo = jax.random.uniform(ks[7], (1, d_model), dtype, -bound_o, bound_o)
    return dict(wq=wq, bq=bq, wk=wk, bk=bk, wv=wv, bv=bv, wo=wo, bo=bo)


# ----------------------------------------------------------------------------
# Pure-JAX reference for a sanity check
# ----------------------------------------------------------------------------
def reference_forward(params, queries, keys, values, n_heads):
    N, L, _ = queries.shape

    def lin(x, w_h, b_h):  # w_h: (H, Din, dh), b_h: (H, 1, dh) -> (N, T, H, dh)
        return jnp.einsum('ntd,hde->nthe', x, w_h) + b_h[:, 0][None, None]

    q = lin(queries, params['wq'], params['bq'])
    k = lin(keys, params['wk'], params['bk'])
    v = lin(values, params['wv'], params['bv'])
    dk = q.shape[-1]
    scores = jnp.einsum('nlhe,nshe->nhls', q, k) / (dk ** 0.5)
    p = jax.nn.softmax(scores, axis=-1)
    out = jnp.einsum('nhls,nshd->nlhd', p, v).reshape(N, L, -1)   # (N, L, H*dv)
    wo2d = params['wo'].reshape(-1, params['wo'].shape[-1])       # (H*dv, D)
    return out @ wo2d + params['bo']


if __name__ == "__main__":
    key = jax.random.PRNGKey(0)
    N, L, S, d_model, n_heads = 2, 8, 8, 32, 4

    k_params, k_q, k_k, k_v = jax.random.split(key, 4)
    params = init_params(k_params, d_model, n_heads)

    queries = jax.random.normal(k_q, (N, L, d_model), jnp.float32)
    keys = jax.random.normal(k_k, (N, S, d_model), jnp.float32)
    values = jax.random.normal(k_v, (N, S, d_model), jnp.float32)

    # 1) cross-attention path, exact (f32) compute -> tight parity check
    out = attention_layer_forward(params, queries, keys, values, n_heads,
                                  compute_dtype=jnp.float32)
    out = jax.block_until_ready(out)
    ref = reference_forward(params, queries, keys, values, n_heads)
    assert out.shape == (N, L, d_model)
    # tolerance slightly loosened because of pl.reciprocal(approx=True)
    assert jnp.allclose(out, ref, atol=5e-3, rtol=5e-3), "mismatch vs reference"

    # 2) self-attention path, bf16 compute (fused QKV, head-major projections)
    out_sa = attention_layer_forward(params, queries, queries, queries, n_heads,
                                     compute_dtype=jnp.bfloat16)
    out_sa = jax.block_until_ready(out_sa)
    ref_sa = reference_forward(params, queries, queries, queries, n_heads)
    assert out_sa.shape == (N, L, d_model)
    assert jnp.allclose(out_sa, ref_sa, atol=1e-1, rtol=1e-1), \
        "mismatch vs reference (self-attention bf16 fused path)"

    print("KERNEL_OK")
</pallas_src>

<mosaic_0001>
module attributes {stable_mosaic.version = 11 : i64} {
  func.func @_proj_heads_kernel(%arg0: i32, %arg1: i32, %arg2: i32, %arg3: memref<1x8x32xf32, #tpu.memory_space<vmem>>, %arg4: memref<1x32x8xf32, #tpu.memory_space<vmem>>, %arg5: memref<1x1x8xf32, #tpu.memory_space<vmem>>, %arg6: memref<1x1x8x8xf32, #tpu.memory_space<vmem>>) attributes {dimension_semantics = [#tpu.dimension_semantics<parallel>, #tpu.dimension_semantics<parallel>, #tpu.dimension_semantics<parallel>], iteration_bounds = array<i64: 2, 1, 4>, scalar_prefetch = 0 : i64, scratch_operands = 0 : i64, tpu.core_type = #tpu.core_type<tc>, window_params = [{transform_indices = @transform_0, window_bounds = array<i64: 1, 8, 32>}, {transform_indices = @transform_1, window_bounds = array<i64: 1, 32, 8>}, {transform_indices = @transform_2, window_bounds = array<i64: 1, 1, 8>}, {transform_indices = @transform_3, window_bounds = array<i64: 1, 1, 8, 8>}]} {
    %c0 = arith.constant 0 : index
    %c0_0 = arith.constant 0 : index
    %c0_1 = arith.constant 0 : index
    %0 = vector.load %arg3[%c0, %c0_0, %c0_1] : memref<1x8x32xf32, #tpu.memory_space<vmem>>, vector<1x8x32xf32>
    %1 = vector.shape_cast %0 : vector<1x8x32xf32> to vector<8x32xf32>
    %c0_2 = arith.constant 0 : index
    %c0_3 = arith.constant 0 : index
    %c0_4 = arith.constant 0 : index
    %2 = vector.load %arg4[%c0_2, %c0_3, %c0_4] : memref<1x32x8xf32, #tpu.memory_space<vmem>>, vector<1x32x8xf32>
    %3 = vector.shape_cast %2 : vector<1x32x8xf32> to vector<32x8xf32>
    %cst = arith.constant dense<0.000000e+00> : vector<8x8xf32>
    %4 = tpu.matmul %1, %3, %cst {dimension_numbers = #tpu.dot_dimension_numbers<[1], [0], [0], [1], [0, 0, 1, 1], [], []>} : vector<8x32xf32>, vector<32x8xf32>, vector<8x8xf32> -> vector<8x8xf32>
    %c0_5 = arith.constant 0 : index
    %c0_6 = arith.constant 0 : index
    %c0_7 = arith.constant 0 : index
    %5 = vector.load %arg5[%c0_5, %c0_6, %c0_7] : memref<1x1x8xf32, #tpu.memory_space<vmem>>, vector<1x1x8xf32>
    %6 = vector.shape_cast %5 : vector<1x1x8xf32> to vector<1x8xf32>
    %7 = vector.broadcast %6 : vector<1x8xf32> to vector<8x8xf32>
    %8 = arith.addf %4, %7 : vector<8x8xf32>
    %c0_8 = arith.constant 0 : index
    %c0_9 = arith.constant 0 : index
    %c0_10 = arith.constant 0 : index
    %c0_11 = arith.constant 0 : index
    %9 = vector.load %arg6[%c0_8, %c0_9, %c0_10, %c0_11] : memref<1x1x8x8xf32, #tpu.memory_space<vmem>>, vector<1x1x8x8xf32>
    %10 = vector.shape_cast %9 : vector<1x1x8x8xf32> to vector<8x8xf32>
    %11 = vector.shape_cast %8 : vector<8x8xf32> to vector<1x1x8x8xf32>
    tpu.vector_store %arg6[%c0_8, %c0_9, %c0_10, %c0_11], %11 {strides = array<i32>} : memref<1x1x8x8xf32, #tpu.memory_space<vmem>>, vector<1x1x8x8xf32>,
    return
  }
  func.func @transform_0(%arg0: i32, %arg1: i32, %arg2: i32) -> (i32, i32, i32) {
    %c0_i32 = arith.constant 0 : i32
    %c0_i32_0 = arith.constant 0 : i32
    return %arg0, %arg1, %c0_i32 : i32, i32, i32
  }
  func.func @transform_1(%arg0: i32, %arg1: i32, %arg2: i32) -> (i32, i32, i32) {
    %c0_i32 = arith.constant 0 : i32
    %c0_i32_0 = arith.constant 0 : i32
    %c0_i32_1 = arith.constant 0 : i32
    return %arg2, %c0_i32, %c0_i32_0 : i32, i32, i32
  }
  func.func @transform_2(%arg0: i32, %arg1: i32, %arg2: i32) -> (i32, i32, i32) {
    %c0_i32 = arith.constant 0 : i32
    %c0_i32_0 = arith.constant 0 : i32
    %c0_i32_1 = arith.constant 0 : i32
    return %arg2, %c0_i32, %c0_i32_0 : i32, i32, i32
  }
  func.func @transform_3(%arg0: i32, %arg1: i32, %arg2: i32) -> (i32, i32, i32, i32) {
    %c0_i32 = arith.constant 0 : i32
    %c0_i32_0 = arith.constant 0 : i32
    return %arg0, %arg2, %arg1, %c0_i32 : i32, i32, i32, i32
  }
}

</mosaic_0001>

<bundles_post_ra>
// kernel: tpu_custom_call.1
= control target key start
LH: loop header
LB: loop body
LE: loop exit
PB: predicated region body
PF: predicated region fallthrough
CT: control target
= control target key end

     0   :  { %s815_s0 = inlined_call_operand.vmem [shape: f32[2,8,32], index: 0, kind: input, shape index: {}]   ;;  %s816_s1 = inlined_call_operand.vmem [shape: f32[4,32,8], index: 1, kind: input, shape index: {}]   ;;  %s817_s2 = inlined_call_operand.vmem [shape: f32[4,1,8], index: 2, kind: input, shape index: {}]   ;;  %s818_s3 = inlined_call_operand.hbm [shape: f32[2,4,8,8], index: 3, kind: output, shape index: {}]  }
   0x1   :  { %819 = sst [smem:[#allocation5_spill]] %s816_s1 }
   0x2   :  { %8 = vsyncpa [#allocation3], 0 }
   0x3   :  { %10 = vsyncpa [#allocation3 + $0x1], 0  ;;  %s672_s12 = smov 0   ;;  %s674_s13 = smov 0  }
   0x4   :  { %s676_s14 = smov 0   ;;  %s678_s15 = smov 0  }
   0x5   :  { %s680_s16 = smov 0   ;;  %s682_s17 = smov 0  }
   0x6   :  { %s684_s18 = smov 0   ;;  %s686_s19 = smov 0  }
   0x7 LB: > { %s439_s20 = sadd.s32 4294967295, %s646_s19   ;;  %s440_s21 = sadd.s32 4294967294, %s646_s19   ;;  %s646_s19 = sphi %s686_s19, %s16_s19   ;;  %s642_s18 = sphi %s684_s18, %s829_s18   ;;  %s638_s17 = sphi %s682_s17, %s828_s17   ;;  %s634_s16 = sphi %s680_s16, %s827_s16   ;;  %s630_s15 = sphi %s678_s15, %s826_s15   ;;  %s626_s14 = sphi %s676_s14, %s825_s14   ;;  %s622_s13 = sphi %s674_s13, %s824_s13   ;;  %s618_s12 = sphi %s672_s12, %s823_s12  }
   0x8   : > { %s28_s22 = sadd.s32 1, %s638_s17  ;;  %s35_s23 = sadd.s32 1, %s642_s18 }
   0x9   : > { %p29_p0 = scmp.ge.s32.totalorder %s28_s22, 4  ;;  %p136_p1 = scmp.ne.s32.totalorder %s626_s14, %s622_s13 }
   0xa   : > { %p137_p2 = scmp.eq.s32.totalorder %s439_s20, 7  ;;  %p142_p5 = scmp.ne.s32.totalorder %s622_s13, %s618_s12 }
   0xb   : > { %s831_s22 = smov (%p29_p0, %s28_s22), 0  ;;  %s833_s23 = smov (!%p29_p0, %s35_s23), %s642_s18 }
   0xc   : > { %s120_s24 = ssub.s32 %s638_s17, %s831_s22  ;;  %p723_p3 = por %p137_p2, %p136_p1 }
   0xd   : > { %p37_p4 = scmp.ge.s32.totalorder %s833_s23, 2  ;;  %p143_p6 = scmp.eq.s32.totalorder %s440_s21, 7 }
   0xe   : > { %p443_p7 = scmp.ge.s32.totalorder %s646_s19, 1  ;;  %p185_p9 = scmp.lt.s32.totalorder %s646_s19, 9 }
   0xf   : > { %s835_s23 = smov (%p37_p4, %s833_s23), 0  ;;  %p732_p8 = por %p143_p6, %p142_p5 }
  0x10   : > { %s119_s27 = ssub.s32 %s642_s18, %s835_s23  ;;  %s126_s28 = sadd.s32 1, %s626_s14 }
  0x11   : > { %s121_s29 = sor.u32 %s120_s24, %s119_s27  ;;  %p186_p10 = pnand %p443_p7, %p185_p9 }
  0x12   : > { %p124_p11 = scmp.eq.s32.totalorder %s121_s29, 0  ;;  %p226_p12 = scmp.lt.s32.totalorder (!%p186_p10), %s630_s15, 3  ;;  %v648_v0 = vmov (!%p186_p10), 0.0|0.0   ;;  %vm649_vm0 = vmmov (!%p186_p10), 0   ;;  %v650_v1 = vmov (!%p186_p10), 0.0   ;;  %vm246_vm1 = vcmask (!%p186_p10), 261120  }
  0x13   : > { %189 = sbr.rel (%p186_p10) target bundleno = 268 (0x10c), region = 32  ;;  %p219_p13 = scmp.lt.s32.totalorder (!%p186_p10), %s634_s16, 1  ;;  %472 = vmatprep.subr.bf16.mxu0 (!%p186_p10), %v648_v0  ;;  %469 = vmatprep.mubr.msk.f32.mxu0 (!%p186_p10), %vm649_vm0, %v650_v1  ;;  %vm320_vm2 = vcmask (!%p186_p10), 64512  }
  0x14   : > { %s741_s30 = scalar_select %p124_p11, %s626_s14, %s126_s28  }
  0x15   : > { %s822_s1 = sld [smem:[#allocation5_spill]] (!%p186_p10)  ;;  %s216_s24 = sand.u32 (!%p186_p10), 1, %s622_s13  }
  0x16   : > { %s444_s27 = sshll.u32 (!%p186_p10), %s216_s24, 3  ;;  %s451_s28 = sshll.u32 (!%p186_p10), %s634_s16, 2 }
  0x1a   : > { %s227_s4 = scalar_select %p226_p12, %s630_s15, 3 }
  0x1b   : > { %s220_s5 = scalar_select %p219_p13, %s634_s16, 1 }
  0x1c   : > { %s455_s6 = sshll.u32 %s227_s4, 5  ;;  %s233_s7 = scalar_lea.vmem %s817_s2, %s227_s4 }
  0x1d   : > { %s230_s9 = scalar_lea.vmem %s822_s1, %s455_s6  ;;  %s445_s10 = sshll.u32 %s220_s5, 3  ;;  %v448_v9 = vld [vmem:[%s233_s7] ss:$0 sm:$0xff] }
  0x1e   : > { %v235_v2 = vld [vmem:[%s230_s9] sm:$0xff]  ;;  %v236_v3 = vld [vmem:[%s230_s9 + $0x8] sm:$0xff]  ;;  %v237_v4 = vld [vmem:[%s230_s9 + $0x10] sm:$0xff]  ;;  %s225_s21 = scalar_lea.vmem %s815_s0, %s445_s10  ;;  %s335_s5 = sadd.s32 %s630_s15, %s451_s28 }
  0x1f   : > { %v473_v5 = vpack.c.bf16 %v236_v3, %v235_v2  ;;  %v238_v6 = vld [vmem:[%s230_s9 + $0x18] sm:$0xff]  ;;  %v234_v8 = vld [vmem:[%s225_s21] sm:$0xff]  ;;  %s452_s8 = sshll.u32 %s335_s5, 7  ;;  %s218_s9 = scalar_lea.vmem [#allocation2], %s444_s27 }
  0x20   : > { %v476_v7 = vpack.c.bf16 %v238_v6, %v237_v4  ;;  %s339_s1 = sshll.u32 %s218_s9, 4  ;;  %s762_s20 = scalar_lea.hbm %s818_s3, %s452_s8  ;;  %s764_s1 = int_to_ptr.vmem [resolvable:$true] %s339_s1 }
  0x21   : > { %474 = vmatpush3.bf16.msra.mxu0 %v473_v5  ;;  %s323_s15 = scalar_lea.sflag [#allocation3], %s216_s24  ;;  %s552_s16 = scalar_lea.vmem %s764_s1, 128 }
  0x22   : > { %475 = vmatprep.subr.bf16.mxu0 %v648_v0  ;;  %p553_p0 = scmp.ne.s32.totalorder %s764_s1, %s552_s16  ;;  %s651_s4 = smov [#allocation2]  }
  0x23   : > { %s556_s21 = sshll.u32 %s651_s4, 4  ;;  %s557_s21 = int_to_ptr.vmem [resolvable:$false] %s556_s21 }
  0x24   : > { %p554_p1 = pnand %p553_p0, %p723_p3  ;;  %s558_s27 = scalar_lea.vmem %s557_s21, 256 }
  0x25   : > { %477 = vmatpush3.bf16.msra.mxu0 %v476_v7  ;;  %p559_p4 = scmp.lt.s32.totalorder %s764_s1, %s557_s21  ;;  %p560_p5 = scmp.lt.s32.totalorder %s558_s27, %s552_s16 }
  0x26   : > { %p555_p2 = pneg %p554_p1 }
  0x27   : > { %p561_p6 = por %p560_p5, %p559_p4 }
  0x28   : > { %470 = vmatmul.mubr.msk.f32.vlgmr.msra.gmra.mrb[0].mxu0 %vm246_vm1, %v234_v8 }
  0x29   : > { %p562_p7 = pnand %p561_p6, %p555_p2 }
  0xfb   : > { %v316_v10 = vpop.f32.mrb[0].mxu0 }
  0xfc   : > { %v317_v11 = vadd.f32 %v448_v9, %v316_v10  ;;  %v471_v12 = vpop.f32.mrb[1].mxu0 }
  0xfe   : > { %321 = vst.msk [vmem:[%s218_s9] sm:$0xff] %vm320_vm2, %v317_v11 }
  0xff   : > { %565 = shalt.err (!%p562_p7)
}
 0x100   : > { %s566_s24 = scalar_lea.hbm %s762_s20, 128  ;;  %s570_s6 = scalar_lea.hbm %s818_s3, 1024 }
 0x101   : > { %p567_p9 = scmp.ne.s32.totalorder %s762_s20, %s566_s24  ;;  %p571_p12 = scmp.lt.u32.totalorder %s762_s20, %s818_s3 }
 0x102   : > { %p572_p13 = scmp.lt.u32.totalorder %s570_s6, %s566_s24  ;;  %p574_p1 = scmp.lt.u32.totalorder %s566_s24, %s762_s20 }
 0x103   : > { %p568_p10 = pnand %p567_p9, %p723_p3 }
 0x104   : > { %p573_p0 = por %p572_p13, %p571_p12 }
 0x105   : > { %p569_p11 = pneg %p568_p10 }
 0x106   : > { %p575_p2 = por %p574_p1, %p573_p0 }
 0x108   : > { %p576_p4 = pnand %p575_p2, %p569_p11 }
 0x10a   : > { %579 = shalt.err (!%p576_p4)
}
 0x10b   : > { %478 = dma.vmem_to_hbm [thread:$0]  (%p723_p3), %s764_s1, 128, %s762_s20, %s323_s15  }
 0x10c PF: > { %p484_p5 = scmp.ge.s32.totalorder %s646_s19, 2  ;;  %s351_s8 = sand.u32 1, %s618_s12  }
 0x10d   : > { %s352_s9 = scalar_lea.sflag [#allocation3], %s351_s8 }
 0x10e   : > { %p481_p6 = pnand %p484_p5, %p732_p8 }
 0x110   : > { %613 = dma.done.wait (!%p481_p6), %s352_s9, 128  }
 0x111   : > { %615 = vsyncadd (!%p481_p6), %s352_s9, 4294967168  ;;  %s16_s19 = sadd.s32 1, %s646_s19   ;;  %s823_s12 = smov %s622_s13 }
 0x112   : > { %p13_p7 = scmp.ge.s32.totalorder %s16_s19, 10   ;;  %s824_s13 = smov %s626_s14 }
 0x113   : > { %s825_s14 = smov %s741_s30  ;;  %s826_s15 = smov %s638_s17 }
 0x114   : > { %s827_s16 = smov %s642_s18  ;;  %s828_s17 = smov %s831_s22 }
 0x115   : > { %s829_s18 = smov %s835_s23  ;;  %15 = sbr.rel (!%p13_p7) target bundleno = 7 (0x7), region = 73 }
 0x11c   :  { %357 = vsyncpa [#allocation3], 1 }
 0x11d   :  { %359 = vsyncpa [#allocation3 + $0x1], 1 }

</bundles_post_ra>
